<compile_context>
chip_gen: v5e
topology: v5e:2x2
jax: 0.10.0
libtpu: 0.0.40
codegen_flags: <defaults>
</compile_context>

<pallas_src>
import functools
import math

import jax
import jax.numpy as jnp
from jax import lax
from jax.experimental import pallas as pl
from jax.experimental.pallas import tpu as pltpu


def _layernorm(x, w, b, eps=1e-5):
    # x: (N, C) f32; w, b: (1, C) f32 -> broadcast
    mean = jnp.mean(x, axis=-1, keepdims=True)
    var = jnp.mean((x - mean) ** 2, axis=-1, keepdims=True)
    return (x - mean) * lax.rsqrt(var + eps) * w + b


def _gelu_tanh(x):
    # tanh-approx GELU: tanh lowers to the EUP slot (idle during the MLP
    # matmuls) while exact erf is a long VALU polynomial.  Max abs deviation
    # vs erf-GELU is ~3e-3, far inside the bf16-matmul tolerance used here.
    c = math.sqrt(2.0 / math.pi)
    return 0.5 * x * (1.0 + jnp.tanh(c * (x + 0.044715 * (x * x * x))))


def _softmax_last(x):
    m = jnp.max(x, axis=-1, keepdims=True)
    e = jnp.exp(x - m)
    # approx reciprocal -> EUP slot; ~1e-3 relative error on the denominator,
    # acceptable at the stated tolerance.
    return e * pl.reciprocal(jnp.sum(e, axis=-1, keepdims=True), approx=True)


def transformer_block_kernel(
    x_ref,
    ln1_w, ln1_b,
    wqkv_t, bqkv,
    wfc_t, bfc,
    ln2_w, ln2_b,
    w1_t, b1,
    w2_t, b2,
    o_ref,
    attn_scratch,                 # VMEM (N, C) bf16: per-head outputs land here
    *, num_heads, head_dim,
):
    bf = jnp.bfloat16
    x = x_ref[0].astype(jnp.float32)                 # (N, C)
    C = num_heads * head_dim

    # ---------------- attention branch (pre-LN) ----------------
    h = _layernorm(x, ln1_w[...], ln1_b[...])
    # Softmax scale is already folded into the Q columns of wqkv_t / bqkv.
    qkv = jnp.dot(h.astype(bf), wqkv_t[...],
                  preferred_element_type=jnp.float32) + bqkv[...]        # (N, 3C) f32
    # Stage K transposed once (one XLU transpose) so every per-head scores
    # matmul is a plain (N,hd)@(hd,N) with a sublane-aligned row slice of kt.
    kt = qkv[:, C:2 * C].T.astype(bf)                                    # (C, N)
    qkv_bf = qkv.astype(bf)                                              # (N, 3C)

    # TODO(synk): for large N use flash-style key tiling (online softmax)
    # instead of the full per-head (N, N) score tile; unnecessary here.
    for hi in range(num_heads):                      # static unroll; each head
        lo = hi * head_dim                           # writes a disjoint slice
        q = qkv_bf[:, lo:lo + head_dim]                                  # (N, hd)
        v = qkv_bf[:, 2 * C + lo:2 * C + lo + head_dim]                  # (N, hd)
        s = jnp.dot(q, kt[lo:lo + head_dim, :],
                    preferred_element_type=jnp.float32)                  # (N, N)
        p = _softmax_last(s)                                             # f32
        ho = jnp.dot(p.astype(bf), v, preferred_element_type=jnp.float32)
        attn_scratch[:, lo:lo + head_dim] = ho.astype(bf)

    # One fully-filled (K = C) output projection instead of H K=head_dim ones.
    x = x + jnp.dot(attn_scratch[...], wfc_t[...],
                    preferred_element_type=jnp.float32) + bfc[...]

    # ---------------- MLP branch (pre-LN) ----------------
    h = _layernorm(x, ln2_w[...], ln2_b[...])
    h = jnp.dot(h.astype(bf), w1_t[...],
                preferred_element_type=jnp.float32) + b1[...]
    h = _gelu_tanh(h)
    # TODO(synk): nn.Dropout is identity at inference; training-mode RNG dropout not implemented.
    h = jnp.dot(h.astype(bf), w2_t[...],
                preferred_element_type=jnp.float32) + b2[...]
    x = x + h

    o_ref[0] = x.astype(o_ref.dtype)


def _vmem_limit_bytes():
    # Generation-aware VMEM budget: ~87.5% of physical capacity
    # (128 MiB on v5e/v6e, 64 MiB on v7x) leaves headroom for Mosaic
    # internal scratch and the double-buffered x / output blocks.
    try:
        cap = getattr(pltpu.get_tpu_info(), "vmem_capacity_bytes", None)
        if cap:
            return int(cap * 7 // 8)
    except Exception:
        pass
    return 56 << 20   # conservative fallback (fits v7x's 64 MiB)


def transformer_block(x, params, num_heads):
    B, N, C = x.shape
    assert C % num_heads == 0
    head_dim = C // num_heads
    scale = head_dim ** (-0.5)

    (ln1_w, ln1_b, wqkv_t, bqkv, wfc_t, bfc,
     ln2_w, ln2_b, w1_t, b1, w2_t, b2) = params

    # Fold the softmax scale into the Q third of the QKV projection once
    # (removes H x (N,hd) VPU multiplies and an extra live f32 qkv copy).
    wqkv_t = wqkv_t.at[:, :C].multiply(scale)
    bqkv = bqkv.at[:, :C].multiply(scale)

    # Cast matmul weights once to bf16 (MXU-native); LN params / biases stay f32.
    bf = jnp.bfloat16
    kernel_params = (
        ln1_w, ln1_b,
        wqkv_t.astype(bf), bqkv,
        wfc_t.astype(bf), bfc,
        ln2_w, ln2_b,
        w1_t.astype(bf), b1,
        w2_t.astype(bf), b2,
    )

    kernel = functools.partial(
        transformer_block_kernel, num_heads=num_heads, head_dim=head_dim)

    # Whole-array VMEM specs: constant w.r.t. the grid, staged once
    # (not double-buffered per grid step).
    vmem_full = pl.BlockSpec(memory_space=pltpu.MemorySpace.VMEM)

    # TODO(synk): for very large C/hidden on v7x (64 MiB VMEM), tile the MLP
    # weights over hidden via a second grid axis; and add a parallel
    # query-row-tile axis so both v7x TensorCores are busy when B == 1.
    return pl.pallas_call(
        kernel,
        out_shape=jax.ShapeDtypeStruct((B, N, C), x.dtype),
        grid=(B,),
        in_specs=[pl.BlockSpec((1, N, C), lambda b: (b, 0, 0))] + [vmem_full] * 12,
        out_specs=pl.BlockSpec((1, N, C), lambda b: (b, 0, 0)),
        scratch_shapes=[pltpu.VMEM((N, C), jnp.bfloat16)],
        compiler_params=pltpu.CompilerParams(
            dimension_semantics=("parallel",),
            vmem_limit_bytes=_vmem_limit_bytes(),
        ),
    )(x, *kernel_params)


def init_params(key, embed_dim, num_heads, mlp_ratio=4.0):
    hidden = int(embed_dim * mlp_ratio)
    ks = jax.random.split(key, 8)
    f32 = jnp.float32

    ln1_w = jnp.ones((1, embed_dim), f32)
    ln1_b = jnp.zeros((1, embed_dim), f32)
    wqkv_t = (0.02 * jax.random.normal(ks[0], (embed_dim, 3 * embed_dim))).astype(f32)
    bqkv = (0.01 * jax.random.normal(ks[1], (1, 3 * embed_dim))).astype(f32)
    wfc_t = (0.02 * jax.random.normal(ks[2], (embed_dim, embed_dim))).astype(f32)
    bfc = (0.01 * jax.random.normal(ks[3], (1, embed_dim))).astype(f32)
    ln2_w = jnp.ones((1, embed_dim), f32)
    ln2_b = jnp.zeros((1, embed_dim), f32)
    w1_t = (0.02 * jax.random.normal(ks[4], (embed_dim, hidden))).astype(f32)
    b1 = (0.01 * jax.random.normal(ks[5], (1, hidden))).astype(f32)
    w2_t = (0.02 * jax.random.normal(ks[6], (hidden, embed_dim))).astype(f32)
    b2 = (0.01 * jax.random.normal(ks[7], (1, embed_dim))).astype(f32)

    return (ln1_w, ln1_b, wqkv_t, bqkv, wfc_t, bfc,
            ln2_w, ln2_b, w1_t, b1, w2_t, b2)


def reference_transformer_block(x, params, num_heads):
    """Pure-JAX f32 reference mirroring the PyTorch forward (eval mode)."""
    (ln1_w, ln1_b, wqkv_t, bqkv, wfc_t, bfc,
     ln2_w, ln2_b, w1_t, b1, w2_t, b2) = params
    B, N, C = x.shape
    hd = C // num_heads
    scale = hd ** (-0.5)

    def ln(v, w, b):
        m = v.mean(-1, keepdims=True)
        var = ((v - m) ** 2).mean(-1, keepdims=True)
        return (v - m) / jnp.sqrt(var + 1e-5) * w + b

    h = ln(x, ln1_w, ln1_b)
    qkv = h @ wqkv_t + bqkv                                   # (B, N, 3C)
    qkv = qkv.reshape(B, N, 3, num_heads, hd).transpose(2, 0, 3, 1, 4)
    Q, K, V = qkv[0], qkv[1], qkv[2]                          # (B, H, N, hd)
    attn = jnp.einsum("bhqd,bhkd->bhqk", Q, K) * scale
    attn = jax.nn.softmax(attn, axis=-1)
    ao = jnp.einsum("bhqk,bhkd->bhqd", attn, V).transpose(0, 2, 1, 3).reshape(B, N, C)
    x = x + (ao @ wfc_t + bfc)

    h = ln(x, ln2_w, ln2_b)
    h = jax.nn.gelu(h @ w1_t + b1, approximate=False)
    x = x + (h @ w2_t + b2)
    return x


if __name__ == "__main__":
    B, N, C = 2, 8, 32
    num_heads = 4

    key = jax.random.PRNGKey(0)
    kx, kp = jax.random.split(key)
    x = jax.random.normal(kx, (B, N, C), dtype=jnp.float32)
    params = init_params(kp, C, num_heads)

    out = transformer_block(x, params, num_heads)
    out = jax.block_until_ready(out)

    ref = reference_transformer_block(x, params, num_heads)
    assert out.shape == (B, N, C)
    # bf16 matmul operands + tanh-GELU + approx reciprocal vs f32/erf reference
    # -> relaxed tolerance
    assert jnp.allclose(out, ref, atol=2e-2, rtol=2e-2), "mismatch vs reference"

    print("KERNEL_OK")
</pallas_src>

<mosaic_0001>
module attributes {stable_mosaic.version = 11 : i64} {
  func.func @transformer_block_kernel(%arg0: i32, %arg1: memref<1x8x32xf32, #tpu.memory_space<vmem>>, %arg2: memref<1x32xf32, #tpu.memory_space<vmem>>, %arg3: memref<1x32xf32, #tpu.memory_space<vmem>>, %arg4: memref<32x96xbf16, #tpu.memory_space<vmem>>, %arg5: memref<1x96xf32, #tpu.memory_space<vmem>>, %arg6: memref<32x32xbf16, #tpu.memory_space<vmem>>, %arg7: memref<1x32xf32, #tpu.memory_space<vmem>>, %arg8: memref<1x32xf32, #tpu.memory_space<vmem>>, %arg9: memref<1x32xf32, #tpu.memory_space<vmem>>, %arg10: memref<32x128xbf16, #tpu.memory_space<vmem>>, %arg11: memref<1x128xf32, #tpu.memory_space<vmem>>, %arg12: memref<128x32xbf16, #tpu.memory_space<vmem>>, %arg13: memref<1x32xf32, #tpu.memory_space<vmem>>, %arg14: memref<1x8x32xf32, #tpu.memory_space<vmem>>, %arg15: memref<8x32xbf16, #tpu.memory_space<vmem>>) attributes {dimension_semantics = [#tpu.dimension_semantics<parallel>], iteration_bounds = array<i64: 2>, scalar_prefetch = 0 : i64, scratch_operands = 1 : i64, tpu.core_type = #tpu.core_type<tc>, window_params = [{transform_indices = @transform_0, window_bounds = array<i64: 1, 8, 32>}, {pipeline_mode = #tpu.pipeline_mode<synchronous>, transform_indices = @transform_1, window_bounds = array<i64: 1, 32>}, {pipeline_mode = #tpu.pipeline_mode<synchronous>, transform_indices = @transform_2, window_bounds = array<i64: 1, 32>}, {pipeline_mode = #tpu.pipeline_mode<synchronous>, transform_indices = @transform_3, window_bounds = array<i64: 32, 96>}, {pipeline_mode = #tpu.pipeline_mode<synchronous>, transform_indices = @transform_4, window_bounds = array<i64: 1, 96>}, {pipeline_mode = #tpu.pipeline_mode<synchronous>, transform_indices = @transform_5, window_bounds = array<i64: 32, 32>}, {pipeline_mode = #tpu.pipeline_mode<synchronous>, transform_indices = @transform_6, window_bounds = array<i64: 1, 32>}, {pipeline_mode = #tpu.pipeline_mode<synchronous>, transform_indices = @transform_7, window_bounds = array<i64: 1, 32>}, {pipeline_mode = #tpu.pipeline_mode<synchronous>, transform_indices = @transform_8, window_bounds = array<i64: 1, 32>}, {pipeline_mode = #tpu.pipeline_mode<synchronous>, transform_indices = @transform_9, window_bounds = array<i64: 32, 128>}, {pipeline_mode = #tpu.pipeline_mode<synchronous>, transform_indices = @transform_10, window_bounds = array<i64: 1, 128>}, {pipeline_mode = #tpu.pipeline_mode<synchronous>, transform_indices = @transform_11, window_bounds = array<i64: 128, 32>}, {pipeline_mode = #tpu.pipeline_mode<synchronous>, transform_indices = @transform_12, window_bounds = array<i64: 1, 32>}, {transform_indices = @transform_13, window_bounds = array<i64: 1, 8, 32>}]} {
    %c0 = arith.constant 0 : index
    %c0_0 = arith.constant 0 : index
    %c0_1 = arith.constant 0 : index
    %0 = vector.load %arg1[%c0, %c0_0, %c0_1] : memref<1x8x32xf32, #tpu.memory_space<vmem>>, vector<1x8x32xf32>
    %1 = vector.shape_cast %0 : vector<1x8x32xf32> to vector<8x32xf32>
    %c0_2 = arith.constant 0 : index
    %c0_3 = arith.constant 0 : index
    %2 = vector.load %arg2[%c0_2, %c0_3] : memref<1x32xf32, #tpu.memory_space<vmem>>, vector<1x32xf32>
    %c0_4 = arith.constant 0 : index
    %c0_5 = arith.constant 0 : index
    %3 = vector.load %arg3[%c0_4, %c0_5] : memref<1x32xf32, #tpu.memory_space<vmem>>, vector<1x32xf32>
    %cst = arith.constant dense<0.000000e+00> : vector<8xf32>
    %4 = vector.multi_reduction <add>, %1, %cst [1] : vector<8x32xf32> to vector<8xf32>
    %5 = vector.shape_cast %4 : vector<8xf32> to vector<8x1xf32>
    %cst_6 = arith.constant 3.200000e+01 : f32
    %6 = vector.broadcast %cst_6 : f32 to vector<8x1xf32>
    %7 = arith.divf %5, %6 : vector<8x1xf32>
    %8 = vector.broadcast %7 : vector<8x1xf32> to vector<8x32xf32>
    %9 = arith.subf %1, %8 : vector<8x32xf32>
    %10 = arith.mulf %9, %9 : vector<8x32xf32>
    %cst_7 = arith.constant dense<0.000000e+00> : vector<8xf32>
    %11 = vector.multi_reduction <add>, %10, %cst_7 [1] : vector<8x32xf32> to vector<8xf32>
    %12 = vector.shape_cast %11 : vector<8xf32> to vector<8x1xf32>
    %cst_8 = arith.constant 3.200000e+01 : f32
    %13 = vector.broadcast %cst_8 : f32 to vector<8x1xf32>
    %14 = arith.divf %12, %13 : vector<8x1xf32>
    %15 = vector.broadcast %7 : vector<8x1xf32> to vector<8x32xf32>
    %16 = arith.subf %1, %15 : vector<8x32xf32>
    %cst_9 = arith.constant 9.99999974E-6 : f32
    %17 = vector.broadcast %cst_9 : f32 to vector<8x1xf32>
    %18 = arith.addf %14, %17 : vector<8x1xf32>
    %19 = math.rsqrt %18 : vector<8x1xf32>
    %20 = vector.broadcast %19 : vector<8x1xf32> to vector<8x32xf32>
    %21 = arith.mulf %16, %20 : vector<8x32xf32>
    %22 = vector.broadcast %2 : vector<1x32xf32> to vector<8x32xf32>
    %23 = arith.mulf %21, %22 : vector<8x32xf32>
    %24 = vector.broadcast %3 : vector<1x32xf32> to vector<8x32xf32>
    %25 = arith.addf %23, %24 : vector<8x32xf32>
    %26 = arith.truncf %25 : vector<8x32xf32> to vector<8x32xbf16>
    %c0_10 = arith.constant 0 : index
    %c0_11 = arith.constant 0 : index
    %27 = vector.load %arg4[%c0_10, %c0_11] : memref<32x96xbf16, #tpu.memory_space<vmem>>, vector<32x96xbf16>
    %cst_12 = arith.constant dense<0.000000e+00> : vector<8x96xf32>
    %28 = tpu.matmul %26, %27, %cst_12 {dimension_numbers = #tpu.dot_dimension_numbers<[1], [0], [0], [1], [0, 0, 1, 1], [], []>} : vector<8x32xbf16>, vector<32x96xbf16>, vector<8x96xf32> -> vector<8x96xf32>
    %c0_13 = arith.constant 0 : index
    %c0_14 = arith.constant 0 : index
    %29 = vector.load %arg5[%c0_13, %c0_14] : memref<1x96xf32, #tpu.memory_space<vmem>>, vector<1x96xf32>
    %30 = vector.broadcast %29 : vector<1x96xf32> to vector<8x96xf32>
    %31 = arith.addf %28, %30 : vector<8x96xf32>
    %32 = vector.extract_strided_slice %31 {offsets = [0, 32], sizes = [8, 32], strides = [1, 1]} : vector<8x96xf32> to vector<8x32xf32>
    %33 = tpu.transpose %32, [1, 0] : vector<8x32xf32> -> vector<32x8xf32>
    %34 = arith.truncf %33 : vector<32x8xf32> to vector<32x8xbf16>
    %35 = arith.truncf %31 : vector<8x96xf32> to vector<8x96xbf16>
    %36 = vector.extract_strided_slice %35 {offsets = [0, 0], sizes = [8, 8], strides = [1, 1]} : vector<8x96xbf16> to vector<8x8xbf16>
    %37 = vector.extract_strided_slice %35 {offsets = [0, 64], sizes = [8, 8], strides = [1, 1]} : vector<8x96xbf16> to vector<8x8xbf16>
    %38 = vector.extract_strided_slice %34 {offsets = [0, 0], sizes = [8, 8], strides = [1, 1]} : vector<32x8xbf16> to vector<8x8xbf16>
    %cst_15 = arith.constant dense<0.000000e+00> : vector<8x8xf32>
    %39 = tpu.matmul %36, %38, %cst_15 {dimension_numbers = #tpu.dot_dimension_numbers<[1], [0], [0], [1], [0, 0, 1, 1], [], []>} : vector<8x8xbf16>, vector<8x8xbf16>, vector<8x8xf32> -> vector<8x8xf32>
    %cst_16 = arith.constant dense<0xFF800000> : vector<8xf32>
    %40 = vector.multi_reduction <maximumf>, %39, %cst_16 [1] : vector<8x8xf32> to vector<8xf32>
    %41 = vector.shape_cast %40 : vector<8xf32> to vector<8x1xf32>
    %42 = vector.broadcast %41 : vector<8x1xf32> to vector<8x8xf32>
    %43 = arith.subf %39, %42 : vector<8x8xf32>
    %44 = math.exp %43 : vector<8x8xf32>
    %cst_17 = arith.constant dense<0.000000e+00> : vector<8xf32>
    %45 = vector.multi_reduction <add>, %44, %cst_17 [1] : vector<8x8xf32> to vector<8xf32>
    %46 = vector.shape_cast %45 : vector<8xf32> to vector<8x1xf32>
    %47 = tpu.reciprocal %46 {approx = true} : vector<8x1xf32> -> vector<8x1xf32>
    %48 = vector.broadcast %47 : vector<8x1xf32> to vector<8x8xf32>
    %49 = arith.mulf %44, %48 : vector<8x8xf32>
    %50 = arith.truncf %49 : vector<8x8xf32> to vector<8x8xbf16>
    %cst_18 = arith.constant dense<0.000000e+00> : vector<8x8xf32>
    %51 = tpu.matmul %50, %37, %cst_18 {dimension_numbers = #tpu.dot_dimension_numbers<[1], [0], [0], [1], [0, 0, 1, 1], [], []>} : vector<8x8xbf16>, vector<8x8xbf16>, vector<8x8xf32> -> vector<8x8xf32>
    %52 = arith.truncf %51 : vector<8x8xf32> to vector<8x8xbf16>
    %c0_19 = arith.constant 0 : index
    %c0_20 = arith.constant 0 : index
    %53 = vector.load %arg15[%c0_19, %c0_20] : memref<8x32xbf16, #tpu.memory_space<vmem>>, vector<8x8xbf16>
    tpu.vector_store %arg15[%c0_19, %c0_20], %52 {strides = array<i32>} : memref<8x32xbf16, #tpu.memory_space<vmem>>, vector<8x8xbf16>,
    %54 = vector.extract_strided_slice %35 {offsets = [0, 8], sizes = [8, 8], strides = [1, 1]} : vector<8x96xbf16> to vector<8x8xbf16>
    %55 = vector.extract_strided_slice %35 {offsets = [0, 72], sizes = [8, 8], strides = [1, 1]} : vector<8x96xbf16> to vector<8x8xbf16>
    %56 = vector.extract_strided_slice %34 {offsets = [8, 0], sizes = [8, 8], strides = [1, 1]} : vector<32x8xbf16> to vector<8x8xbf16>
    %cst_21 = arith.constant dense<0.000000e+00> : vector<8x8xf32>
    %57 = tpu.matmul %54, %56, %cst_21 {dimension_numbers = #tpu.dot_dimension_numbers<[1], [0], [0], [1], [0, 0, 1, 1], [], []>} : vector<8x8xbf16>, vector<8x8xbf16>, vector<8x8xf32> -> vector<8x8xf32>
    %cst_22 = arith.constant dense<0xFF800000> : vector<8xf32>
    %58 = vector.multi_reduction <maximumf>, %57, %cst_22 [1] : vector<8x8xf32> to vector<8xf32>
    %59 = vector.shape_cast %58 : vector<8xf32> to vector<8x1xf32>
    %60 = vector.broadcast %59 : vector<8x1xf32> to vector<8x8xf32>
    %61 = arith.subf %57, %60 : vector<8x8xf32>
    %62 = math.exp %61 : vector<8x8xf32>
    %cst_23 = arith.constant dense<0.000000e+00> : vector<8xf32>
    %63 = vector.multi_reduction <add>, %62, %cst_23 [1] : vector<8x8xf32> to vector<8xf32>
    %64 = vector.shape_cast %63 : vector<8xf32> to vector<8x1xf32>
    %65 = tpu.reciprocal %64 {approx = true} : vector<8x1xf32> -> vector<8x1xf32>
    %66 = vector.broadcast %65 : vector<8x1xf32> to vector<8x8xf32>
    %67 = arith.mulf %62, %66 : vector<8x8xf32>
    %68 = arith.truncf %67 : vector<8x8xf32> to vector<8x8xbf16>
    %cst_24 = arith.constant dense<0.000000e+00> : vector<8x8xf32>
    %69 = tpu.matmul %68, %55, %cst_24 {dimension_numbers = #tpu.dot_dimension_numbers<[1], [0], [0], [1], [0, 0, 1, 1], [], []>} : vector<8x8xbf16>, vector<8x8xbf16>, vector<8x8xf32> -> vector<8x8xf32>
    %70 = arith.truncf %69 : vector<8x8xf32> to vector<8x8xbf16>
    %c0_25 = arith.constant 0 : index
    %c8 = arith.constant 8 : index
    %71 = vector.load %arg15[%c0_25, %c8] : memref<8x32xbf16, #tpu.memory_space<vmem>>, vector<8x8xbf16>
    tpu.vector_store %arg15[%c0_25, %c8], %70 {strides = array<i32>} : memref<8x32xbf16, #tpu.memory_space<vmem>>, vector<8x8xbf16>,
    %72 = vector.extract_strided_slice %35 {offsets = [0, 16], sizes = [8, 8], strides = [1, 1]} : vector<8x96xbf16> to vector<8x8xbf16>
    %73 = vector.extract_strided_slice %35 {offsets = [0, 80], sizes = [8, 8], strides = [1, 1]} : vector<8x96xbf16> to vector<8x8xbf16>
    %74 = vector.extract_strided_slice %34 {offsets = [16, 0], sizes = [8, 8], strides = [1, 1]} : vector<32x8xbf16> to vector<8x8xbf16>
    %cst_26 = arith.constant dense<0.000000e+00> : vector<8x8xf32>
    %75 = tpu.matmul %72, %74, %cst_26 {dimension_numbers = #tpu.dot_dimension_numbers<[1], [0], [0], [1], [0, 0, 1, 1], [], []>} : vector<8x8xbf16>, vector<8x8xbf16>, vector<8x8xf32> -> vector<8x8xf32>
    %cst_27 = arith.constant dense<0xFF800000> : vector<8xf32>
    %76 = vector.multi_reduction <maximumf>, %75, %cst_27 [1] : vector<8x8xf32> to vector<8xf32>
    %77 = vector.shape_cast %76 : vector<8xf32> to vector<8x1xf32>
    %78 = vector.broadcast %77 : vector<8x1xf32> to vector<8x8xf32>
    %79 = arith.subf %75, %78 : vector<8x8xf32>
    %80 = math.exp %79 : vector<8x8xf32>
    %cst_28 = arith.constant dense<0.000000e+00> : vector<8xf32>
    %81 = vector.multi_reduction <add>, %80, %cst_28 [1] : vector<8x8xf32> to vector<8xf32>
    %82 = vector.shape_cast %81 : vector<8xf32> to vector<8x1xf32>
    %83 = tpu.reciprocal %82 {approx = true} : vector<8x1xf32> -> vector<8x1xf32>
    %84 = vector.broadcast %83 : vector<8x1xf32> to vector<8x8xf32>
    %85 = arith.mulf %80, %84 : vector<8x8xf32>
    %86 = arith.truncf %85 : vector<8x8xf32> to vector<8x8xbf16>
    %cst_29 = arith.constant dense<0.000000e+00> : vector<8x8xf32>
    %87 = tpu.matmul %86, %73, %cst_29 {dimension_numbers = #tpu.dot_dimension_numbers<[1], [0], [0], [1], [0, 0, 1, 1], [], []>} : vector<8x8xbf16>, vector<8x8xbf16>, vector<8x8xf32> -> vector<8x8xf32>
    %88 = arith.truncf %87 : vector<8x8xf32> to vector<8x8xbf16>
    %c0_30 = arith.constant 0 : index
    %c16 = arith.constant 16 : index
    %89 = vector.load %arg15[%c0_30, %c16] : memref<8x32xbf16, #tpu.memory_space<vmem>>, vector<8x8xbf16>
    tpu.vector_store %arg15[%c0_30, %c16], %88 {strides = array<i32>} : memref<8x32xbf16, #tpu.memory_space<vmem>>, vector<8x8xbf16>,
    %90 = vector.extract_strided_slice %35 {offsets = [0, 24], sizes = [8, 8], strides = [1, 1]} : vector<8x96xbf16> to vector<8x8xbf16>
    %91 = vector.extract_strided_slice %35 {offsets = [0, 88], sizes = [8, 8], strides = [1, 1]} : vector<8x96xbf16> to vector<8x8xbf16>
    %92 = vector.extract_strided_slice %34 {offsets = [24, 0], sizes = [8, 8], strides = [1, 1]} : vector<32x8xbf16> to vector<8x8xbf16>
    %cst_31 = arith.constant dense<0.000000e+00> : vector<8x8xf32>
    %93 = tpu.matmul %90, %92, %cst_31 {dimension_numbers = #tpu.dot_dimension_numbers<[1], [0], [0], [1], [0, 0, 1, 1], [], []>} : vector<8x8xbf16>, vector<8x8xbf16>, vector<8x8xf32> -> vector<8x8xf32>
    %cst_32 = arith.constant dense<0xFF800000> : vector<8xf32>
    %94 = vector.multi_reduction <maximumf>, %93, %cst_32 [1] : vector<8x8xf32> to vector<8xf32>
    %95 = vector.shape_cast %94 : vector<8xf32> to vector<8x1xf32>
    %96 = vector.broadcast %95 : vector<8x1xf32> to vector<8x8xf32>
    %97 = arith.subf %93, %96 : vector<8x8xf32>
    %98 = math.exp %97 : vector<8x8xf32>
    %cst_33 = arith.constant dense<0.000000e+00> : vector<8xf32>
    %99 = vector.multi_reduction <add>, %98, %cst_33 [1] : vector<8x8xf32> to vector<8xf32>
    %100 = vector.shape_cast %99 : vector<8xf32> to vector<8x1xf32>
    %101 = tpu.reciprocal %100 {approx = true} : vector<8x1xf32> -> vector<8x1xf32>
    %102 = vector.broadcast %101 : vector<8x1xf32> to vector<8x8xf32>
    %103 = arith.mulf %98, %102 : vector<8x8xf32>
    %104 = arith.truncf %103 : vector<8x8xf32> to vector<8x8xbf16>
    %cst_34 = arith.constant dense<0.000000e+00> : vector<8x8xf32>
    %105 = tpu.matmul %104, %91, %cst_34 {dimension_numbers = #tpu.dot_dimension_numbers<[1], [0], [0], [1], [0, 0, 1, 1], [], []>} : vector<8x8xbf16>, vector<8x8xbf16>, vector<8x8xf32> -> vector<8x8xf32>
    %106 = arith.truncf %105 : vector<8x8xf32> to vector<8x8xbf16>
    %c0_35 = arith.constant 0 : index
    %c24 = arith.constant 24 : index
    %107 = vector.load %arg15[%c0_35, %c24] : memref<8x32xbf16, #tpu.memory_space<vmem>>, vector<8x8xbf16>
    tpu.vector_store %arg15[%c0_35, %c24], %106 {strides = array<i32>} : memref<8x32xbf16, #tpu.memory_space<vmem>>, vector<8x8xbf16>,
    %c0_36 = arith.constant 0 : index
    %c0_37 = arith.constant 0 : index
    %108 = vector.load %arg15[%c0_36, %c0_37] : memref<8x32xbf16, #tpu.memory_space<vmem>>, vector<8x32xbf16>
    %c0_38 = arith.constant 0 : index
    %c0_39 = arith.constant 0 : index
    %109 = vector.load %arg6[%c0_38, %c0_39] : memref<32x32xbf16, #tpu.memory_space<vmem>>, vector<32x32xbf16>
    %cst_40 = arith.constant dense<0.000000e+00> : vector<8x32xf32>
    %110 = tpu.matmul %108, %109, %cst_40 {dimension_numbers = #tpu.dot_dimension_numbers<[1], [0], [0], [1], [0, 0, 1, 1], [], []>} : vector<8x32xbf16>, vector<32x32xbf16>, vector<8x32xf32> -> vector<8x32xf32>
    %111 = arith.addf %1, %110 : vector<8x32xf32>
    %c0_41 = arith.constant 0 : index
    %c0_42 = arith.constant 0 : index
    %112 = vector.load %arg7[%c0_41, %c0_42] : memref<1x32xf32, #tpu.memory_space<vmem>>, vector<1x32xf32>
    %113 = vector.broadcast %112 : vector<1x32xf32> to vector<8x32xf32>
    %114 = arith.addf %111, %113 : vector<8x32xf32>
    %c0_43 = arith.constant 0 : index
    %c0_44 = arith.constant 0 : index
    %115 = vector.load %arg8[%c0_43, %c0_44] : memref<1x32xf32, #tpu.memory_space<vmem>>, vector<1x32xf32>
    %c0_45 = arith.constant 0 : index
    %c0_46 = arith.constant 0 : index
    %116 = vector.load %arg9[%c0_45, %c0_46] : memref<1x32xf32, #tpu.memory_space<vmem>>, vector<1x32xf32>
    %cst_47 = arith.constant dense<0.000000e+00> : vector<8xf32>
    %117 = vector.multi_reduction <add>, %114, %cst_47 [1] : vector<8x32xf32> to vector<8xf32>
    %118 = vector.shape_cast %117 : vector<8xf32> to vector<8x1xf32>
    %cst_48 = arith.constant 3.200000e+01 : f32
    %119 = vector.broadcast %cst_48 : f32 to vector<8x1xf32>
    %120 = arith.divf %118, %119 : vector<8x1xf32>
    %121 = vector.broadcast %120 : vector<8x1xf32> to vector<8x32xf32>
    %122 = arith.subf %114, %121 : vector<8x32xf32>
    %123 = arith.mulf %122, %122 : vector<8x32xf32>
    %cst_49 = arith.constant dense<0.000000e+00> : vector<8xf32>
    %124 = vector.multi_reduction <add>, %123, %cst_49 [1] : vector<8x32xf32> to vector<8xf32>
    %125 = vector.shape_cast %124 : vector<8xf32> to vector<8x1xf32>
    %cst_50 = arith.constant 3.200000e+01 : f32
    %126 = vector.broadcast %cst_50 : f32 to vector<8x1xf32>
    %127 = arith.divf %125, %126 : vector<8x1xf32>
    %128 = vector.broadcast %120 : vector<8x1xf32> to vector<8x32xf32>
    %129 = arith.subf %114, %128 : vector<8x32xf32>
    %cst_51 = arith.constant 9.99999974E-6 : f32
    %130 = vector.broadcast %cst_51 : f32 to vector<8x1xf32>
    %131 = arith.addf %127, %130 : vector<8x1xf32>
    %132 = math.rsqrt %131 : vector<8x1xf32>
    %133 = vector.broadcast %132 : vector<8x1xf32> to vector<8x32xf32>
    %134 = arith.mulf %129, %133 : vector<8x32xf32>
    %135 = vector.broadcast %115 : vector<1x32xf32> to vector<8x32xf32>
    %136 = arith.mulf %134, %135 : vector<8x32xf32>
    %137 = vector.broadcast %116 : vector<1x32xf32> to vector<8x32xf32>
    %138 = arith.addf %136, %137 : vector<8x32xf32>
    %139 = arith.truncf %138 : vector<8x32xf32> to vector<8x32xbf16>
    %c0_52 = arith.constant 0 : index
    %c0_53 = arith.constant 0 : index
    %140 = vector.load %arg10[%c0_52, %c0_53] : memref<32x128xbf16, #tpu.memory_space<vmem>>, vector<32x128xbf16>
    %cst_54 = arith.constant dense<0.000000e+00> : vector<8x128xf32>
    %141 = tpu.matmul %139, %140, %cst_54 {dimension_numbers = #tpu.dot_dimension_numbers<[1], [0], [0], [1], [0, 0, 1, 1], [], []>} : vector<8x32xbf16>, vector<32x128xbf16>, vector<8x128xf32> -> vector<8x128xf32>
    %c0_55 = arith.constant 0 : index
    %c0_56 = arith.constant 0 : index
    %142 = vector.load %arg11[%c0_55, %c0_56] : memref<1x128xf32, #tpu.memory_space<vmem>>, vector<1x128xf32>
    %143 = vector.broadcast %142 : vector<1x128xf32> to vector<8x128xf32>
    %144 = arith.addf %141, %143 : vector<8x128xf32>
    %cst_57 = arith.constant 5.000000e-01 : f32
    %145 = vector.broadcast %cst_57 : f32 to vector<8x128xf32>
    %146 = arith.mulf %145, %144 : vector<8x128xf32>
    %147 = arith.mulf %144, %144 : vector<8x128xf32>
    %148 = arith.mulf %147, %144 : vector<8x128xf32>
    %cst_58 = arith.constant 4.471500e-02 : f32
    %149 = vector.broadcast %cst_58 : f32 to vector<8x128xf32>
    %150 = arith.mulf %149, %148 : vector<8x128xf32>
    %151 = arith.addf %144, %150 : vector<8x128xf32>
    %cst_59 = arith.constant 0.797884583 : f32
    %152 = vector.broadcast %cst_59 : f32 to vector<8x128xf32>
    %153 = arith.mulf %152, %151 : vector<8x128xf32>
    %154 = math.tanh %153 : vector<8x128xf32>
    %cst_60 = arith.constant 1.000000e+00 : f32
    %155 = vector.broadcast %cst_60 : f32 to vector<8x128xf32>
    %156 = arith.addf %155, %154 : vector<8x128xf32>
    %157 = arith.mulf %146, %156 : vector<8x128xf32>
    %158 = arith.truncf %157 : vector<8x128xf32> to vector<8x128xbf16>
    %c0_61 = arith.constant 0 : index
    %c0_62 = arith.constant 0 : index
    %159 = vector.load %arg12[%c0_61, %c0_62] : memref<128x32xbf16, #tpu.memory_space<vmem>>, vector<128x32xbf16>
    %cst_63 = arith.constant dense<0.000000e+00> : vector<8x32xf32>
    %160 = tpu.matmul %158, %159, %cst_63 {dimension_numbers = #tpu.dot_dimension_numbers<[1], [0], [0], [1], [0, 0, 1, 1], [], []>} : vector<8x128xbf16>, vector<128x32xbf16>, vector<8x32xf32> -> vector<8x32xf32>
    %c0_64 = arith.constant 0 : index
    %c0_65 = arith.constant 0 : index
    %161 = vector.load %arg13[%c0_64, %c0_65] : memref<1x32xf32, #tpu.memory_space<vmem>>, vector<1x32xf32>
    %162 = vector.broadcast %161 : vector<1x32xf32> to vector<8x32xf32>
    %163 = arith.addf %160, %162 : vector<8x32xf32>
    %164 = arith.addf %114, %163 : vector<8x32xf32>
    %c0_66 = arith.constant 0 : index
    %c0_67 = arith.constant 0 : index
    %c0_68 = arith.constant 0 : index
    %165 = vector.load %arg14[%c0_66, %c0_67, %c0_68] : memref<1x8x32xf32, #tpu.memory_space<vmem>>, vector<1x8x32xf32>
    %166 = vector.shape_cast %165 : vector<1x8x32xf32> to vector<8x32xf32>
    %167 = vector.shape_cast %164 : vector<8x32xf32> to vector<1x8x32xf32>
    tpu.vector_store %arg14[%c0_66, %c0_67, %c0_68], %167 {strides = array<i32>} : memref<1x8x32xf32, #tpu.memory_space<vmem>>, vector<1x8x32xf32>,
    return
  }
  func.func @transform_0(%arg0: i32) -> (i32, i32, i32) {
    %c0_i32 = arith.constant 0 : i32
    %c0_i32_0 = arith.constant 0 : i32
    %c0_i32_1 = arith.constant 0 : i32
    return %arg0, %c0_i32, %c0_i32_0 : i32, i32, i32
  }
  func.func @transform_1(%arg0: i32) -> (i32, i32) {
    %c0_i32 = arith.constant 0 : i32
    %c0_i32_0 = arith.constant 0 : i32
    %c0_i32_1 = arith.constant 0 : i32
    return %c0_i32, %c0_i32_0 : i32, i32
  }
  func.func @transform_2(%arg0: i32) -> (i32, i32) {
    %c0_i32 = arith.constant 0 : i32
    %c0_i32_0 = arith.constant 0 : i32
    %c0_i32_1 = arith.constant 0 : i32
    return %c0_i32, %c0_i32_0 : i32, i32
  }
  func.func @transform_3(%arg0: i32) -> (i32, i32) {
    %c0_i32 = arith.constant 0 : i32
    %c0_i32_0 = arith.constant 0 : i32
    %c0_i32_1 = arith.constant 0 : i32
    return %c0_i32, %c0_i32_0 : i32, i32
  }
  func.func @transform_4(%arg0: i32) -> (i32, i32) {
    %c0_i32 = arith.constant 0 : i32
    %c0_i32_0 = arith.constant 0 : i32
    %c0_i32_1 = arith.constant 0 : i32
    return %c0_i32, %c0_i32_0 : i32, i32
  }
  func.func @transform_5(%arg0: i32) -> (i32, i32) {
    %c0_i32 = arith.constant 0 : i32
    %c0_i32_0 = arith.constant 0 : i32
    %c0_i32_1 = arith.constant 0 : i32
    return %c0_i32, %c0_i32_0 : i32, i32
  }
  func.func @transform_6(%arg0: i32) -> (i32, i32) {
    %c0_i32 = arith.constant 0 : i32
    %c0_i32_0 = arith.constant 0 : i32
    %c0_i32_1 = arith.constant 0 : i32
    return %c0_i32, %c0_i32_0 : i32, i32
  }
  func.func @transform_7(%arg0: i32) -> (i32, i32) {
    %c0_i32 = arith.constant 0 : i32
    %c0_i32_0 = arith.constant 0 : i32
    %c0_i32_1 = arith.constant 0 : i32
    return %c0_i32, %c0_i32_0 : i32, i32
  }
  func.func @transform_8(%arg0: i32) -> (i32, i32) {
    %c0_i32 = arith.constant 0 : i32
    %c0_i32_0 = arith.constant 0 : i32
    %c0_i32_1 = arith.constant 0 : i32
    return %c0_i32, %c0_i32_0 : i32, i32
  }
  func.func @transform_9(%arg0: i32) -> (i32, i32) {
    %c0_i32 = arith.constant 0 : i32
    %c0_i32_0 = arith.constant 0 : i32
    %c0_i32_1 = arith.constant 0 : i32
    return %c0_i32, %c0_i32_0 : i32, i32
  }
  func.func @transform_10(%arg0: i32) -> (i32, i32) {
    %c0_i32 = arith.constant 0 : i32
    %c0_i32_0 = arith.constant 0 : i32
    %c0_i32_1 = arith.constant 0 : i32
    return %c0_i32, %c0_i32_0 : i32, i32
  }
  func.func @transform_11(%arg0: i32) -> (i32, i32) {
    %c0_i32 = arith.constant 0 : i32
    %c0_i32_0 = arith.constant 0 : i32
    %c0_i32_1 = arith.constant 0 : i32
    return %c0_i32, %c0_i32_0 : i32, i32
  }
  func.func @transform_12(%arg0: i32) -> (i32, i32) {
    %c0_i32 = arith.constant 0 : i32
    %c0_i32_0 = arith.constant 0 : i32
    %c0_i32_1 = arith.constant 0 : i32
    return %c0_i32, %c0_i32_0 : i32, i32
  }
  func.func @transform_13(%arg0: i32) -> (i32, i32, i32) {
    %c0_i32 = arith.constant 0 : i32
    %c0_i32_0 = arith.constant 0 : i32
    %c0_i32_1 = arith.constant 0 : i32
    return %arg0, %c0_i32, %c0_i32_0 : i32, i32, i32
  }
}

</mosaic_0001>

<bundles_post_ra>
// kernel: tpu_custom_call.1
= control target key start
LH: loop header
LB: loop body
LE: loop exit
PB: predicated region body
PF: predicated region fallthrough
CT: control target
= control target key end

     0   :  { %s1604_s0 = inlined_call_operand.vmem [shape: f32[2,8,32], index: 0, kind: input, shape index: {}]   ;;  %s1605_s1 = inlined_call_operand.vmem [shape: f32[1,32], index: 1, kind: input, shape index: {}]   ;;  %s1606_s2 = inlined_call_operand.vmem [shape: f32[1,32], index: 2, kind: input, shape index: {}]   ;;  %s1607_s3 = inlined_call_operand.vmem [shape: bf16[32,96], index: 3, kind: input, shape index: {}]   ;;  %s1608_s4 = inlined_call_operand.vmem [shape: f32[1,96], index: 4, kind: input, shape index: {}]   ;;  %s1609_s5 = inlined_call_operand.vmem [shape: bf16[32,32], index: 5, kind: input, shape index: {}]   ;;  %s1610_s6 = inlined_call_operand.vmem [shape: f32[1,32], index: 6, kind: input, shape index: {}]   ;;  %s1611_s7 = inlined_call_operand.vmem [shape: f32[1,32], index: 7, kind: input, shape index: {}]   ;;  %s1612_s8 = inlined_call_operand.vmem [shape: f32[1,32], index: 8, kind: input, shape index: {}]   ;;  %s1613_s9 = inlined_call_operand.vmem [shape: bf16[32,128], index: 9, kind: input, shape index: {}]   ;;  %s1614_s10 = inlined_call_operand.vmem [shape: f32[1,128], index: 10, kind: input, shape index: {}]   ;;  %s1615_s11 = inlined_call_operand.vmem [shape: bf16[128,32], index: 11, kind: input, shape index: {}]   ;;  %s1616_s12 = inlined_call_operand.vmem [shape: f32[1,32], index: 12, kind: input, shape index: {}]   ;;  %s1617_s13 = inlined_call_operand.hbm [shape: f32[2,8,32], index: 13, kind: output, shape index: {}]  }
   0x1   :  { %1618 = sst [smem:[#allocation6_spill]] %s1604_s0 }
   0x2   :  { %1619 = sst [smem:[#allocation7_spill]] %s1605_s1 }
   0x3   :  { %1620 = sst [smem:[#allocation8_spill]] %s1606_s2 }
   0x4   :  { %1621 = sst [smem:[#allocation9_spill]] %s1607_s3 }
   0x5   :  { %18 = vsyncpa [#allocation4], 0 }
   0x6   :  { %20 = vsyncpa [#allocation4 + $0x1], 0  ;;  %s1396_s25 = smov 0   ;;  %s1398_s26 = smov 0  }
   0x7   :  { %s1400_s27 = smov 0   ;;  %s1402_s28 = smov 0  }
   0x8 LB: > { %s1417_s29 = sadd.s32 4294967295, %s1312_s28   ;;  %s1075_s30 = sadd.s32 4294967294, %s1312_s28   ;;  %s1312_s28 = sphi %s1402_s28, %s1631_s28   ;;  %s1308_s27 = sphi %s1400_s27, %s1630_s27   ;;  %s1304_s26 = sphi %s1398_s26, %s1629_s26   ;;  %s1300_s25 = sphi %s1396_s25, %s1628_s25  }
   0x9   : > { %s1421_s14 = sadd.s32 1, %s1312_s28   ;;  %s311_s15 = sadd.s32 1, %s1308_s27 }
   0xa   : > { %s308_s16 = ssub.s32 %s1312_s28, %s1421_s14  ;;  %p321_p0 = scmp.ne.s32.totalorder %s1308_s27, %s1304_s26 }
   0xb   : > { %p309_p1 = scmp.eq.s32.totalorder %s308_s16, 0  ;;  %p322_p2 = scmp.eq.s32.totalorder %s1417_s29, 1 }
   0xc   : > { %p327_p3 = scmp.ne.s32.totalorder %s1304_s26, %s1300_s25  ;;  %p328_p4 = scmp.eq.s32.totalorder %s1075_s30, 1 }
   0xd   : > { %s1432_s17 = scalar_select %p309_p1, %s1308_s27, %s311_s15  }
   0xe   : > { %p1434_p5 = por %p322_p2, %p321_p0  ;;  %p1438_p6 = por %p328_p4, %p327_p3 }
   0xf   : > { %p1078_p7 = scmp.ge.s32.totalorder %s1312_s28, 1  ;;  %p389_p8 = scmp.lt.s32.totalorder %s1312_s28, 3 }
  0x11   : > { %p390_p9 = pnand %p1078_p7, %p389_p8 }
  0x12   : > { %p432_p10 = scmp.lt.s32.totalorder (!%p390_p9), %s1417_s29, 1  ;;  %s1624_s0 = sld [smem:[#allocation6_spill]] (!%p390_p9) }
  0x13   : > { %393 = sbr.rel (%p390_p9) target bundleno = 2443 (0x98b), region = 72  ;;  %s1625_s3 = sld [smem:[#allocation9_spill]] (!%p390_p9) }
  0x14   : > { %s1626_s1 = sld [smem:[#allocation7_spill]] (!%p390_p9)  ;;  %s1315_s16 = smov (!%p390_p9), 96  }
  0x15   : > { %s1627_s2 = sld [smem:[#allocation8_spill]] (!%p390_p9)  ;;  %s1318_s22 = smov (!%p390_p9), 48  }
  0x16   : > { %s1319_s23 = smov (!%p390_p9), 64   ;;  %s1321_s30 = smov (!%p390_p9), 104  }
  0x17   : > { %s1322_s15 = smov (!%p390_p9), 40  }
  0x18   : > { %s433_s20 = scalar_select %p432_p10, %s1417_s29, 1  ;;  %vm440_vm0 = vcmask 261120   ;;  %v1314_v2 = vmov 32.0   ;;  %v1220_v32 = vld [vmem:[%s1608_s4] ss:$0 sm:$0xff]  ;;  %vm560_vm5 = vcmask 1043456  }
  0x19   : > { %1226 = vrcp.f32 %v1314_v2  ;;  %v1153_v14 = vld [vmem:[%s1625_s3 + $0x8] sm:$0xff]  ;;  %v1152_v15 = vld [vmem:[%s1625_s3] sm:$0xff]  ;;  %vm556_vm6 = vcmask 64512   ;;  %vm614_vm7 = vcmask 60416   ;;  %vm675_vm8 = vcmask 126016  }
  0x1a   : > { %s1080_s21 = sshll.u32 %s433_s20, 3  ;;  %508 = vmatpush.bf16.msra.mxu0 %v1153_v14  ;;  %v1218_v25 = vld [vmem:[%s1626_s1] ss:$0 sm:$0xff]  ;;  %s1316_s20 = smov 120   ;;  %vm736_vm9 = vcmask 191616   ;;  %vm797_vm10 = vcmask 257216  }
  0x1b   : > { %s435_s24 = scalar_lea.vmem %s1624_s0, %s1080_s21  ;;  %v1219_v28 = vld [vmem:[%s1627_s2] ss:$0 sm:$0xff]  ;;  %s1317_s21 = smov 56  }
  0x1c   : > { %v1449_v0 = vld [vmem:[%s435_s24] sm:$0xff]  ;;  %s1320_s24 = smov 112   ;;  %s429_s0 = sand.u32 1, %s1304_s26  }
  0x1d   : > { %v441_v1 = vsel %vm440_vm0, %v1449_v0, 0.0  ;;  %s1079_s1 = sshll.u32 %s429_s0, 3 }
  0x1e   : > { %442 = vadd.xlane.f32.xlu0 %v441_v1  ;;  %509 = vmatpush.bf16.msra.mxu0 %v1152_v15 }
  0x1f   : > { %v1227_v3 = vpop.eup %1226 }
  0x20   : > { %v445_v4 = vmul.f32 32.0, %v1227_v3  ;;  %vm449_vm1 = vweird.f32 %v1227_v3 }
  0x22   : > { %v446_v5 = vsub.f32 1.0, %v445_v4 }
  0x24   : > { %v447_v6 = vmul.f32 %v1227_v3, %v446_v5 }
  0x26   : > { %v448_v7 = vadd.f32 %v1227_v3, %v447_v6 }
  0x28   : > { %v1453_v8 = vsel %vm449_vm1, %v1227_v3, %v448_v7 }
  0x91   : > { %v443_v9 = vpop.xlane.xlu0 %442 }
  0x92   : > { %v451_v10 = vmul.f32 %v1453_v8, %v443_v9 }
  0x94   : > { %v452_v11 = vsub.f32 %v1449_v0, %v451_v10 }
  0x96   : > { %v453_v12 = vmul.f32 %v452_v11, %v452_v11 }
  0x98   : > { %v454_v13 = vsel %vm440_vm0, %v453_v12, 0.0 }
  0x99   : > { %455 = vadd.xlane.f32.xlu0 %v454_v13 }
 0x10c   : > { %v456_v16 = vpop.xlane.xlu0 %455 }
 0x10d   : > { %v457_v17 = vmul.f32 %v456_v16, %v1453_v8 }
 0x10f   : > { %v458_v18 = vadd.f32 1e-05, %v457_v17 }
 0x111   : > { %1228 = vrsqrt.f32 %v458_v18  ;;  %vm465_vm3 = vweird.f32 %v458_v18 }
 0x117   : > { %v1229_v19 = vpop.eup %1228 }
 0x118   : > { %v460_v20 = vmul.f32 %v1229_v19, %v458_v18  ;;  %vm466_vm2 = vweird.f32 %v1229_v19 }
 0x119   : > { %vm467_vm4 = vmor %vm465_vm3, %vm466_vm2 }
 0x11a   : > { %v461_v21 = vmul.f32 %v1229_v19, %v460_v20 }
 0x11c   : > { %v462_v22 = vmul.f32 0.5, %v461_v21 }
 0x11e   : > { %v463_v23 = vsub.f32 1.5, %v462_v22 }
 0x120   : > { %v464_v24 = vmul.f32 %v1229_v19, %v463_v23 }
 0x122   : > { %v468_v26 = vsel %vm467_vm4, %v1229_v19, %v464_v24 }
 0x123   : > { %v469_v27 = vmul.f32 %v468_v26, %v452_v11 }
 0x125   : > { %v473_v29 = vmul.f32 %v1218_v25, %v469_v27 }
 0x127   : > { %v477_v30 = vadd.f32 %v1219_v28, %v473_v29 }
 0x129   : > { %v478_v31 = vpack.c.bf16 %v477_v30, %v477_v30 }
 0x12b   : > { %1089 = vmatmul.msk.bf16.vlgmr.msra.gmra.mxu0 %vm440_vm0, %v478_v31 }
 0x1a8   : > { %v511_v33 = vpop.f32.mrf.mxu0 }
 0x1a9   : > { %v512_v34 = vadd.f32 %v1220_v32, %v511_v33 }
 0x1ab   : > { %v555_v35 = vpack.c.bf16 %v512_v34, %v512_v34  ;;  %516 = vrot.lane.b32.xlu1 %v512_v34, %s1315_s16  ;;  %s1323_s16 = smov 8  }
 0x1ad   : > { %v590_v36 = vunpack.c.l.b16 %v555_v35 }
 0x1af   : > { %v1475_v38 = vpack.c.b16 %v590_v36, %v590_v36 }
 0x1b0   : > { %v513_v37 = vpop.f32.mrf.mxu0 }
 0x1b3   : > { %616 = vrot.lane.b32.xlu1 %v1475_v38, %s1316_s20  ;;  %s1324_s20 = smov 16  }
 0x1bb   : > { %649 = vrot.lane.b32.xlu1 %v1475_v38, %s1317_s21  ;;  %s1325_s21 = smov 24  }
 0x21d   : > { %v517_v39 = vpop.permute.xlu1 %516 }
 0x21e   : > { %519 = vxpose.xlu2.b32.start.end [1/1] (short) (narrow) %v517_v39, 32 }
 0x225   : > { %v617_v40 = vpop.permute.xlu1 %616 }
 0x22d   : > { %v650_v42 = vpop.permute.xlu1 %649 }
 0x22e   : > { %v655_v45 = vsel %vm560_vm5, %v650_v42, 0 }
 0x2b7   : > { %v535_v41 = vpop.trf.xlu2 }
 0x2b8   : > { %v551_v43 = vpack.c.bf16 %v535_v41, %v535_v41 }
 0x2ba   : > { %v562_v44 = vsel %vm560_vm5, %v551_v43, 0 }
 0x2bb   : > { %571 = vmatpush.bf16.msra.mxu1 %v562_v44 }
 0x2be   : > { %1090 = vmatmul.msk.bf16.vlgmr.msra.gmra.mxu1 %vm556_vm6, %v555_v35 }
 0x2bf   : > { %664 = vmatpush.bf16.msrb.mxu1 %v655_v45  ;;  %v536_v46 = vpop.trf.xlu2 }
 0x2c0   : > { %v552_v47 = vpack.c.bf16 %v536_v46, %v536_v46 }
 0x2c2   : > { %v622_v48 = vsel %vm560_vm5, %v552_v47, 0 }
 0x2c3   : > { %631 = vmatpush.bf16.msra.mxu3 %v622_v48 }
 0x2c6   : > { %1092 = vmatmul.msk.bf16.vlgmr.msra.gmra.mxu3 %vm556_vm6, %v617_v40 }
 0x2c7   : > { %v537_v51 = vpop.trf.xlu2 }
 0x2c8   : > { %v553_v9 = vpack.c.bf16 %v537_v51, %v537_v51 }
 0x2ca   : > { %v683_v12 = vsel %vm560_vm5, %v553_v9, 0 }
 0x2cf   : > { %v538_v53 = vpop.trf.xlu2 }
 0x2d0   : > { %v554_v54 = vpack.c.bf16 %v538_v53, %v538_v53 }
 0x2d2   : > { %v744_v57 = vsel %vm560_vm5, %v554_v54, 0 }
 0x2d3   : > { %753 = vmatpush.bf16.msra.mxu1 %v744_v57 }
 0x33b   : > { %v573_v49 = vpop.f32.mrf.mxu1 }
 0x33c   : > { %v577_v50 = vsel %vm556_vm6, %v573_v49, -inf }
 0x33d   : > { %578 = vmax.xlane.f32.xlu2 %v577_v50 }
 0x343   : > { %v575_v52 = vpop.f32.mrf.mxu1 }
 0x349   : > { %v633_v55 = vpop.f32.mrf.mxu3 }
 0x34a   : > { %v637_v56 = vsel %vm556_vm6, %v633_v55, -inf }
 0x34b   : > { %638 = vmax.xlane.f32.xlu0 %v637_v56 }
 0x351   : > { %v635_v58 = vpop.f32.mrf.mxu3 }
 0x355   : > { %710 = vrot.lane.b32.xlu2 %v1475_v38, %s1318_s22 }
 0x35f   : > { %592 = vrot.lane.b32.xlu0 %v1475_v38, %s1319_s23 }
 0x3b0   : > { %v579_v59 = vpop.xlane.xlu2 %578 }
 0x3b1   : > { %v580_v60 = vsub.f32 %v573_v49, %v579_v59 }
 0x3b3   : > { %v581_v61 = vmul.f32 1.442695, %v580_v60 }
 0x3b5   : > { %1230 = vpow2.f32 %v581_v61 }
 0x3b8   : > { %v711_v62 = vpop.permute.xlu2 %710 }
 0x3b9   : > { %v716_v63 = vsel %vm560_vm5, %v711_v62, 0  ;;  %v1155_v62 = vld [vmem:[%s1609_s5 + $0x8] sm:$0xff] }
 0x3ba   : > { %725 = vmatpush.bf16.msrb.mxu3 %v716_v63  ;;  %v1154_v63 = vld [vmem:[%s1609_s5] sm:$0xff] }
 0x3bb   : > { %v1231_v1 = vpop.eup %1230 }
 0x3bc   : > { %v583_v2 = vsel %vm556_vm6, %v1231_v1, 0.0 }
 0x3bd   : > { %584 = vadd.xlane.f32.xlu1 %v583_v2 }
 0x3be   : > { %v639_v3 = vpop.xlane.xlu0 %638 }
 0x3bf   : > { %v640_v4 = vsub.f32 %v633_v55, %v639_v3 }
 0x3c1   : > { %v641_v5 = vmul.f32 1.442695, %v640_v4  ;;  %v1221_v4 = vld [vmem:[%s1610_s6] ss:$0 sm:$0xff] }
 0x3c3   : > { %1232 = vpow2.f32 %v641_v5 }
 0x3c9   : > { %v1233_v6 = vpop.eup %1232 }
 0x3ca   : > { %v643_v7 = vsel %vm556_vm6, %v1233_v6, 0.0 }
 0x3cb   : > { %644 = vadd.xlane.f32.xlu0 %v643_v7 }
 0x3d1   : > { %v593_v10 = vpop.permute.xlu0 %592 }
 0x3d2   : > { %v598_v11 = vsel %vm560_vm5, %v593_v10, 0 }
 0x3d3   : > { %607 = vmatpush.bf16.msra.mxu2 %v598_v11 }
 0x3d6   : > { %677 = vrot.lane.b32.xlu1 %v1475_v38, %s1320_s24 }
 0x3d7   : > { %692 = vmatpush.bf16.msrb.mxu2 %v683_v12 }
 0x3df   : > { %738 = vrot.lane.b32.xlu0 %v1475_v38, %s1321_s30 }
 0x430   : > { %v585_v13 = vpop.xlane.xlu1 %584 }
 0x431   : > { %1234 = vrcp.f32 %v585_v13 }
 0x437   : > { %v1235_v14 = vpop.eup %1234 }
 0x438   : > { %v587_v15 = vmul.f32 %v1235_v14, %v1231_v1 }
 0x43a   : > { %v588_v16 = vpack.c.bf16 %v587_v15, %v587_v15 }
 0x43c   : > { %1091 = vmatmul.msk.bf16.vlgmr.msra.gmra.mxu2 %vm556_vm6, %v588_v16  ;;  %v1156_v16 = vld [vmem:[%s1613_s9] sm:$0xff] }
 0x43d   : > { %825 = vmatpush.bf16.msra.mxu2 %v1155_v62 }
 0x43e   : > { %v645_v17 = vpop.xlane.xlu0 %644 }
 0x43f   : > { %1236 = vrcp.f32 %v645_v17  ;;  %v1165_v17 = vld [vmem:[%s1615_s11 + $0x38] sm:$0xff] }
 0x440   : > { %985 = vmatpush.bf16.msrb.mxu0 %v1165_v17 }
 0x441   : > { %826 = vmatpush.bf16.msra.mxu2 %v1154_v63 }
 0x445   : > { %v1237_v18 = vpop.eup %1236 }
 0x446   : > { %v647_v19 = vmul.f32 %v1237_v18, %v1233_v6 }
 0x448   : > { %v648_v20 = vpack.c.bf16 %v647_v19, %v647_v19  ;;  %v678_v21 = vpop.permute.xlu1 %677 }
 0x44a   : > { %1093 = vmatmul.msk.bf16.vlgmr.msrb.gmra.mxu1 %vm556_vm6, %v648_v20  ;;  %v1164_v20 = vld [vmem:[%s1615_s11 + $0x30] sm:$0xff] }
 0x44b   : > { %986 = vmatpush.bf16.msrb.mxu0 %v1164_v20 }
 0x44c   : > { %1094 = vmatmul.msk.bf16.vlgmr.msrb.gmra.mxu2 %vm556_vm6, %v678_v21 }
 0x451   : > { %v739_v22 = vpop.permute.xlu0 %738 }
 0x45a   : > { %1096 = vmatmul.msk.bf16.vlgmr.msra.gmra.mxu1 %vm556_vm6, %v739_v22 }
 0x4bf   : > { %v609_v23 = vpop.f32.mrf.mxu2 }
 0x4c0   : > { %v613_v24 = vpack.c.bf16 %v609_v23, %v609_v23 }
 0x4c2   : > { %615 = vst.msk [vmem:[#allocation2] sm:$0xf] %vm614_vm7, %v613_v24 }
 0x4c7   : > { %v611_v25 = vpop.f32.mrf.mxu2  ;;  %v666_v26 = vpop.f32.mrf.mxu1 }
 0x4cf   : > { %v668_v27 = vpop.f32.mrf.mxu1  ;;  %v694_v28 = vpop.f32.mrf.mxu2 }
 0x4d0   : > { %v698_v29 = vsel %vm556_vm6, %v694_v28, -inf }
 0x4d1   : > { %699 = vmax.xlane.f32.xlu1 %v698_v29 }
 0x4d7   : > { %v696_v30 = vpop.f32.mrf.mxu2  ;;  %v755_v31 = vpop.f32.mrf.mxu1 }
 0x4d8   : > { %v759_v32 = vsel %vm556_vm6, %v755_v31, -inf  ;;  %v1223_v30 = vld [vmem:[%s1612_s8] ss:$0 sm:$0xff] }
 0x4d9   : > { %760 = vmax.xlane.f32.xlu0 %v759_v32 }
 0x4df   : > { %v757_v33 = vpop.f32.mrf.mxu1 }
 0x4ed   : > { %771 = vrot.lane.b32.xlu0 %v1475_v38, %s1322_s15  ;;  %v670_v38 = vpack.c.bf16 %v666_v26, %v666_v26  ;;  %s431_s15 = scalar_lea.vmem [#allocation3], %s1079_s1  ;;  %s1270_s1 = scalar_lea.hbm %s1617_s13, 16 }
 0x544   : > { %v700_v34 = vpop.xlane.xlu1 %699 }
 0x545   : > { %v701_v35 = vsub.f32 %v694_v28, %v700_v34  ;;  %v1163_v34 = vld [vmem:[%s1615_s11 + $0x28] sm:$0xff] }
 0x546   : > { %987 = vmatpush.bf16.msrb.mxu0 %v1163_v34 }
 0x547   : > { %v702_v36 = vmul.f32 1.442695, %v701_v35  ;;  %v1162_v35 = vld [vmem:[%s1615_s11 + $0x20] sm:$0xff] }
 0x549   : > { %1238 = vpow2.f32 %v702_v36  ;;  %v1161_v36 = vld [vmem:[%s1615_s11 + $0x18] sm:$0xff] }
 0x54a   : > { %988 = vmatpush.bf16.msrb.mxu0 %v1162_v35 }
 0x54c   : > { %v761_v37 = vpop.xlane.xlu0 %760 }
 0x54d   : > { %v762_v39 = vsub.f32 %v755_v31, %v761_v37  ;;  %v1160_v37 = vld [vmem:[%s1615_s11 + $0x10] sm:$0xff] }
 0x54e   : > { %989 = vmatpush.bf16.msrb.mxu0 %v1161_v36 }
 0x54f   : > { %v1239_v40 = vpop.eup %1238  ;;  %v763_v41 = vmul.f32 1.442695, %v762_v39  ;;  %v1159_v39 = vld [vmem:[%s1615_s11 + $0x8] sm:$0xff] }
 0x550   : > { %v704_v42 = vsel %vm556_vm6, %v1239_v40, 0.0 }
 0x551   : > { %1240 = vpow2.f32 %v763_v41  ;;  %705 = vadd.xlane.f32.xlu1 %v704_v42  ;;  %v1224_v41 = vld [vmem:[%s1614_s10] ss:$0 sm:$0xff] }
 0x552   : > { %990 = vmatpush.bf16.msrb.mxu0 %v1160_v37 }
 0x556   : > { %991 = vmatpush.bf16.msrb.mxu0 %v1159_v39 }
 0x557   : > { %v1241_v43 = vpop.eup %1240 }
 0x558   : > { %v765_v44 = vsel %vm556_vm6, %v1241_v43, 0.0 }
 0x559   : > { %766 = vadd.xlane.f32.xlu1 %v765_v44 }
 0x55f   : > { %v772_v45 = vpop.permute.xlu0 %771 }
 0x560   : > { %v777_v46 = vsel %vm560_vm5, %v772_v45, 0 }
 0x561   : > { %786 = vmatpush.bf16.msrb.mxu1 %v777_v46 }
 0x572   : > { %672 = vrot.lane.b32.xlu1 %v670_v38, %s1323_s16  ;;  %s1013_s16 = sshll.u32 %s431_s15, 4  ;;  %s1014_s16 = int_to_ptr.vmem [resolvable:$true] %s1013_s16 }
 0x5c4   : > { %v706_v47 = vpop.xlane.xlu1 %705 }
 0x5c5   : > { %1242 = vrcp.f32 %v706_v47 }
 0x5cb   : > { %v1243_v48 = vpop.eup %1242 }
 0x5cc   : > { %v708_v49 = vmul.f32 %v1243_v48, %v1239_v40  ;;  %v767_v50 = vpop.xlane.xlu1 %766  ;;  %v1158_v40 = vld [vmem:[%s1615_s11] sm:$0xff] }
 0x5cd   : > { %1244 = vrcp.f32 %v767_v50  ;;  %992 = vmatpush.bf16.msrb.mxu0 %v1158_v40 }
 0x5ce   : > { %v709_v51 = vpack.c.bf16 %v708_v49, %v708_v49 }
 0x5d0   : > { %1095 = vmatmul.msk.bf16.vlgmr.msrb.gmra.mxu3 %vm556_vm6, %v709_v51 }
 0x5d3   : > { %v1245_v52 = vpop.eup %1244 }
 0x5d4   : > { %v769_v53 = vmul.f32 %v1245_v52, %v1241_v43 }
 0x5d6   : > { %v770_v54 = vpack.c.bf16 %v769_v53, %v769_v53 }
 0x5d8   : > { %1097 = vmatmul.msk.bf16.vlgmr.msrb.gmra.mxu1 %vm556_vm6, %v770_v54  ;;  %v1225_v54 = vld [vmem:[%s1616_s12] ss:$0 sm:$0xff] }
 0x5e4   : > { %v673_v55 = vpop.permute.xlu1 %672 }
 0x5e5   : > { %676 = vst.msk [vmem:[#allocation2] sm:$0xf] %vm675_vm8, %v673_v55 }
 0x653   : > { %v727_v56 = vpop.f32.mrf.mxu3 }
 0x654   : > { %v731_v57 = vpack.c.bf16 %v727_v56, %v727_v56 }
 0x655   : > { %v788_v58 = vpop.f32.mrf.mxu1 }
 0x656   : > { %v792_v59 = vpack.c.bf16 %v788_v58, %v788_v58  ;;  %733 = vrot.lane.b32.xlu0 %v731_v57, %s1324_s20  ;;  %s1149_s20 = sshll.u32 %s1417_s29, 3  ;;  %s1001_s29 = scalar_lea.sflag [#allocation4], %s429_s0 }
 0x657   : > { %s1011_s30 = scalar_lea.hbm %s1617_s13, %s1149_s20 }
 0x658   : > { %794 = vrot.lane.b32.xlu2 %v792_v59, %s1325_s21  ;;  %s1015_s2 = sshll.u32 %s1011_s30, 4  ;;  %s1016_s2 = int_to_ptr.hbm [resolvable:$true] %s1015_s2 }
 0x659   : > { %s1264_s3 = sshra.s32 %s1016_s2, 4  ;;  %s1265_s3 = int_to_ptr.hbm [resolvable:$true] %s1264_s3 }
 0x65a   : > { %s1266_s21 = scalar_lea.hbm %s1265_s3, 8  ;;  %p1271_p0 = scmp.lt.s32.totalorder %s1265_s3, %s1617_s13 }
 0x65b   : > { %v729_v60 = vpop.f32.mrf.mxu3  ;;  %p1267_p11 = scmp.ne.s32.totalorder %s1265_s3, %s1266_s21  ;;  %p1272_p1 = scmp.lt.s32.totalorder %s1270_s1, %s1266_s21 }
 0x65d   : > { %v790_v61 = vpop.f32.mrf.mxu1  ;;  %p1268_p12 = pnand %p1267_p11, %p1434_p5  ;;  %p1273_p2 = por %p1272_p1, %p1271_p0 }
 0x65f   : > { %p1269_p13 = pneg %p1268_p12 }
 0x661   : > { %p1274_p3 = pnand %p1273_p2, %p1269_p13 }
 0x6b2   : > { %v795_v2 = vpop.permute.xlu2 %794 }
 0x6c8   : > { %v734_v1 = vpop.permute.xlu0 %733 }
 0x6c9   : > { %737 = vst.msk [vmem:[#allocation2] sm:$0xf] %vm736_vm9, %v734_v1 }
 0x6ca   : > { %798 = vst.msk [vmem:[#allocation2] sm:$0xf] %vm797_vm10, %v795_v2 }
 0x6d1   : > { %v799_v3 = vld [vmem:[#allocation2] sm:$0xf] }
 0x6d2   : > { %1106 = vmatmul.msk.bf16.vlgmr.msra.gmra.mxu2 %vm440_vm0, %v799_v3 }
 0x755   : > { %v828_v5 = vpop.f32.mrf.mxu2 }
 0x756   : > { %v832_v6 = vadd.f32 %v828_v5, %v1449_v0  ;;  %v1157_v0 = vld [vmem:[%s1613_s9 + $0x8] sm:$0xff] }
 0x757   : > { %900 = vmatpush.bf16.msra.mxu3 %v1157_v0 }
 0x758   : > { %v1519_v7 = vadd.f32 %v1221_v4, %v832_v6 }
 0x75a   : > { %v840_v9 = vsel %vm440_vm0, %v1519_v7, 0.0 }
 0x75b   : > { %841 = vadd.xlane.f32.xlu1 %v840_v9  ;;  %901 = vmatpush.bf16.msra.mxu3 %v1156_v16 }
 0x75d   : > { %v830_v10 = vpop.f32.mrf.mxu2 }
 0x7ce   : > { %v842_v11 = vpop.xlane.xlu1 %841 }
 0x7cf   : > { %v843_v12 = vmul.f32 %v842_v11, %v1453_v8 }
 0x7d1   : > { %v844_v13 = vsub.f32 %v1519_v7, %v843_v12 }
 0x7d3   : > { %v845_v14 = vmul.f32 %v844_v13, %v844_v13 }
 0x7d5   : > { %v846_v15 = vsel %vm440_vm0, %v845_v14, 0.0 }
 0x7d6   : > { %847 = vadd.xlane.f32.xlu0 %v846_v15 }
 0x849   : > { %v848_v18 = vpop.xlane.xlu0 %847 }
 0x84a   : > { %v849_v19 = vmul.f32 %v848_v18, %v1453_v8  ;;  %v1222_v8 = vld [vmem:[%s1611_s7] ss:$0 sm:$0xff] }
 0x84c   : > { %v850_v21 = vadd.f32 1e-05, %v849_v19 }
 0x84e   : > { %1246 = vrsqrt.f32 %v850_v21  ;;  %vm857_vm12 = vweird.f32 %v850_v21 }
 0x854   : > { %v1247_v22 = vpop.eup %1246 }
 0x855   : > { %v852_v23 = vmul.f32 %v1247_v22, %v850_v21  ;;  %vm858_vm11 = vweird.f32 %v1247_v22 }
 0x856   : > { %vm859_vm13 = vmor %vm857_vm12, %vm858_vm11 }
 0x857   : > { %v853_v24 = vmul.f32 %v1247_v22, %v852_v23 }
 0x859   : > { %v854_v25 = vmul.f32 0.5, %v853_v24 }
 0x85b   : > { %v855_v26 = vsub.f32 1.5, %v854_v25 }
 0x85d   : > { %v856_v27 = vmul.f32 %v1247_v22, %v855_v26 }
 0x85f   : > { %v860_v28 = vsel %vm859_vm13, %v1247_v22, %v856_v27 }
 0x860   : > { %v861_v29 = vmul.f32 %v860_v28, %v844_v13 }
 0x862   : > { %v865_v31 = vmul.f32 %v1222_v8, %v861_v29 }
 0x864   : > { %v869_v32 = vadd.f32 %v1223_v30, %v865_v31 }
 0x866   : > { %v870_v33 = vpack.c.bf16 %v869_v32, %v869_v32 }
 0x868   : > { %1115 = vmatmul.msk.bf16.vlgmr.msra.gmra.mxu3 %vm440_vm0, %v870_v33 }
 0x8eb   : > { %v903_v42 = vpop.f32.mrf.mxu3 }
 0x8ec   : > { %v904_v43 = vadd.f32 %v1224_v41, %v903_v42 }
 0x8ee   : > { %v908_v44 = vmul.f32 %v904_v43, %v904_v43  ;;  %v907_v50 = vmul.f32 0.5, %v904_v43 }
 0x8f0   : > { %v909_v45 = vmul.f32 %v908_v44, %v904_v43 }
 0x8f2   : > { %v910_v46 = vmul.f32 0.044715, %v909_v45 }
 0x8f3   : > { %v905_v38 = vpop.f32.mrf.mxu3 }
 0x8f4   : > { %v911_v47 = vadd.f32 %v910_v46, %v904_v43 }
 0x8f6   : > { %v912_v48 = vmul.f32 0.7978846, %v911_v47 }
 0x8f8   : > { %1248 = vtanh.f32 %v912_v48 }
 0x8fe   : > { %v1249_v49 = vpop.eup %1248 }
 0x8ff   : > { %v914_v51 = vadd.f32 1.0, %v1249_v49 }
 0x901   : > { %v915_v52 = vmul.f32 %v914_v51, %v907_v50 }
 0x903   : > { %v916_v53 = vpack.c.bf16 %v915_v52, %v915_v52 }
 0x905   : > { %993 = vmatmul.bf16.vlgmr.msrb.gmra.mxu0 %v916_v53 }
 0x982   : > { %v994_v55 = vpop.f32.mrf.mxu0 }
 0x983   : > { %v995_v56 = vadd.f32 %v1225_v54, %v994_v55 }
 0x985   : > { %v998_v57 = vadd.f32 %v995_v56, %v1519_v7 }
 0x987   : > { %999 = vst.msk [vmem:[%s431_s15] sm:$0xff] %vm440_vm0, %v998_v57 }
 0x988   : > { %1277 = shalt.err (!%p1274_p3)
}
 0x989   : > { %1166 = dma.vmem_to_hbm [thread:$0]  (%p1434_p5), %s1014_s16, 128, %s1016_s2, %s1001_s29  }
 0x98a   : > { %v996_v58 = vpop.f32.mrf.mxu0 }
 0x98b PF: > { %p1172_p4 = scmp.ge.s32.totalorder %s1312_s28, 2  ;;  %s1027_s0 = sand.u32 1, %s1300_s25  }
 0x98c   : > { %s1028_s30 = scalar_lea.sflag [#allocation4], %s1027_s0 }
 0x98d   : > { %p1169_p7 = pnand %p1172_p4, %p1438_p6 }
 0x98f   : > { %p1170_p8 = pneg %p1169_p7 }
 0x991   : > { %1295 = dma.done.wait (%p1170_p8), %s1028_s30, 128  }
 0x992   : > { %1297 = vsyncadd (%p1170_p8), %s1028_s30, 4294967168  ;;  %p23_p9 = scmp.ge.s32.totalorder %s1421_s14, 4   ;;  %s1628_s25 = smov %s1304_s26 }
 0x993   : > { %s1629_s26 = smov %s1308_s27  ;;  %s1630_s27 = smov %s1432_s17 }
 0x994   : > { %s1631_s28 = smov %s1421_s14  ;;  %25 = sbr.rel (!%p23_p9) target bundleno = 8 (0x8), region = 107 }
 0x999   :  { %1034 = vsyncpa [#allocation4], 1 }
 0x99a   :  { %1036 = vsyncpa [#allocation4 + $0x1], 1 }

</bundles_post_ra>
